<compile_context>
chip_gen: v6e
topology: v6e:2x2x1
jax: 0.10.0
libtpu: 0.0.40
codegen_flags: <defaults>
</compile_context>

<pallas_src>
import jax
import jax.numpy as jnp
from jax.experimental import pallas as pl
from jax.experimental.pallas import tpu as pltpu


IN_FEATURES = 512
OUT_FEATURES = 7
OUT_PAD = 128            # lane-dense output width
TM_MAX = 2048            # 2048x512 f32 x-tile = 4 MiB; pipelined total ~10.5 MiB
PALLAS_MIN_ROWS = 1024   # below this, plain XLA beats a custom-call launch


def _round_up(x, m):
    return ((x + m - 1) // m) * m


def _fc_kernel(x_ref, w_ref, b_ref, o_ref):
    # x_ref: (TM, 512) f32 VMEM   w_ref: (512, 128) f32 VMEM (cols 7..127 zero)
    # b_ref: (1, 128)  f32 VMEM   o_ref: (TM, 128)  f32 VMEM
    acc = jnp.dot(x_ref[...], w_ref[...], preferred_element_type=jnp.float32)
    o_ref[...] = (acc + b_ref[...]).astype(o_ref.dtype)


def prepare_fc_params(fc_weight, fc_bias):
    """One-time prep: transpose torch-layout weight and lane-pad to 128.

    fc_weight: (7, 512) float32  (torch nn.Linear layout)
    fc_bias:   (7,) float32
    returns:   w_padded (512, 128), b_padded (1, 128)
    """
    w = jnp.zeros((IN_FEATURES, OUT_PAD), jnp.float32)
    w = w.at[:, :OUT_FEATURES].set(fc_weight.astype(jnp.float32).T)
    b = jnp.zeros((1, OUT_PAD), jnp.float32)
    b = b.at[:, :OUT_FEATURES].set(
        fc_bias.astype(jnp.float32).reshape(1, OUT_FEATURES))
    return w, b


def _fc_pallas(x2d, w_padded, b_padded):
    n = x2d.shape[0]
    # Guarantee >= 2 grid tiles when possible (v7x megacore), cap at TM_MAX so
    # the double-buffered footprint stays inside every generation's default
    # scoped VMEM (v5e: 16 MiB).
    tm = min(TM_MAX, max(8, _round_up(pl.cdiv(n, 2), 8)))
    grid = (pl.cdiv(n, tm),)  # ragged last tile: Pallas masks OOB rows

    return pl.pallas_call(
        _fc_kernel,
        out_shape=jax.ShapeDtypeStruct((n, OUT_PAD), jnp.float32),
        grid=grid,
        in_specs=[
            pl.BlockSpec((tm, IN_FEATURES), lambda i: (i, 0)),
            pl.BlockSpec((IN_FEATURES, OUT_PAD), lambda i: (0, 0)),
            pl.BlockSpec((1, OUT_PAD), lambda i: (0, 0)),
        ],
        out_specs=pl.BlockSpec((tm, OUT_PAD), lambda i: (i, 0)),
        compiler_params=pltpu.CompilerParams(
            dimension_semantics=("parallel",)),
    )(x2d, w_padded, b_padded)


def net_forward(x_nchw, w_padded, b_padded, *, force_pallas=False,
                slice_output=True):
    """Pallas implementation of Net.forward (identity backbone + fc).

    x_nchw:   (N, 512, 1, 1) float32 -- backbone output
    w_padded: (512, 128) float32     -- from prepare_fc_params
    b_padded: (1, 128) float32       -- from prepare_fc_params
    returns:  (N, 7) float32   (or (N, 128) lane-padded if slice_output=False)
    """
    n = x_nchw.shape[0]
    # backbone(x).view(-1, 512): row-major flatten, same as torch .view
    x2d = x_nchw.reshape(n, IN_FEATURES).astype(jnp.float32)

    if n < PALLAS_MIN_ROWS and not force_pallas:
        # Tiny batch: custom-call launch + full weight DMA dwarf ~1 KB/row of
        # useful work; fused XLA matmul is strictly faster here.
        return x2d @ w_padded[:, :OUT_FEATURES] + b_padded[0, :OUT_FEATURES]

    out = _fc_pallas(x2d, w_padded, b_padded)
    if slice_output:
        return out[:, :OUT_FEATURES]
    return out  # lane-padded (n, 128); columns >= 7 are exactly zero


if __name__ == "__main__":
    key = jax.random.PRNGKey(0)
    k_x, k_w, k_b, k_x2 = jax.random.split(key, 4)

    # Deterministic fc parameters (torch Linear layout: weight (7,512), bias (7,))
    fc_weight = jax.random.normal(
        k_w, (OUT_FEATURES, IN_FEATURES), dtype=jnp.float32) * 0.02
    fc_bias = jax.random.normal(k_b, (OUT_FEATURES,), dtype=jnp.float32) * 0.02

    # One-time parameter prep (hoisted out of the per-call path).
    w_padded, b_padded = prepare_fc_params(fc_weight, fc_bias)

    # Case 1: tiny demo batch (N=2) -> XLA fast path.
    batch = 2
    x = jax.random.normal(k_x, (batch, IN_FEATURES, 1, 1), dtype=jnp.float32)
    ref = x.reshape(batch, IN_FEATURES) @ fc_weight.T + fc_bias
    out_fast = jax.block_until_ready(net_forward(x, w_padded, b_padded))
    assert out_fast.shape == (batch, OUT_FEATURES)
    assert jnp.allclose(out_fast, ref, atol=1e-4, rtol=1e-4)

    # Case 2: same tiny batch forced through the Pallas kernel
    # (exercises grid=(1,) with a masked ragged tile).
    out_pallas = jax.block_until_ready(
        net_forward(x, w_padded, b_padded, force_pallas=True))
    assert out_pallas.shape == (batch, OUT_FEATURES)
    assert jnp.allclose(out_pallas, ref, atol=1e-4, rtol=1e-4)

    # Case 3: moderate batch forced through the Pallas kernel
    # (>= 2 grid tiles for megacore + ragged last tile).
    batch3 = 300
    x3 = jax.random.normal(k_x2, (batch3, IN_FEATURES, 1, 1), dtype=jnp.float32)
    ref3 = x3.reshape(batch3, IN_FEATURES) @ fc_weight.T + fc_bias
    out3 = jax.block_until_ready(
        net_forward(x3, w_padded, b_padded, force_pallas=True))
    assert out3.shape == (batch3, OUT_FEATURES)
    assert jnp.allclose(out3, ref3, atol=1e-4, rtol=1e-4)

    print("KERNEL_OK")
</pallas_src>

<mosaic_0001>
module attributes {stable_mosaic.version = 11 : i64} {
  func.func @_fc_kernel(%arg0: i32, %arg1: memref<8x512xf32, #tpu.memory_space<vmem>>, %arg2: memref<512x128xf32, #tpu.memory_space<vmem>>, %arg3: memref<1x128xf32, #tpu.memory_space<vmem>>, %arg4: memref<8x128xf32, #tpu.memory_space<vmem>>) attributes {dimension_semantics = [#tpu.dimension_semantics<parallel>], iteration_bounds = array<i64: 1>, scalar_prefetch = 0 : i64, scratch_operands = 0 : i64, tpu.core_type = #tpu.core_type<tc>, window_params = [{transform_indices = @transform_0, window_bounds = array<i64: 8, 512>}, {pipeline_mode = #tpu.pipeline_mode<synchronous>, transform_indices = @transform_1, window_bounds = array<i64: 512, 128>}, {pipeline_mode = #tpu.pipeline_mode<synchronous>, transform_indices = @transform_2, window_bounds = array<i64: 1, 128>}, {transform_indices = @transform_3, window_bounds = array<i64: 8, 128>}]} {
    %c0 = arith.constant 0 : index
    %c0_0 = arith.constant 0 : index
    %0 = vector.load %arg1[%c0, %c0_0] : memref<8x512xf32, #tpu.memory_space<vmem>>, vector<8x512xf32>
    %c0_1 = arith.constant 0 : index
    %c0_2 = arith.constant 0 : index
    %1 = vector.load %arg2[%c0_1, %c0_2] : memref<512x128xf32, #tpu.memory_space<vmem>>, vector<512x128xf32>
    %cst = arith.constant dense<0.000000e+00> : vector<8x128xf32>
    %2 = tpu.matmul %0, %1, %cst {dimension_numbers = #tpu.dot_dimension_numbers<[1], [0], [0], [1], [0, 0, 1, 1], [], []>} : vector<8x512xf32>, vector<512x128xf32>, vector<8x128xf32> -> vector<8x128xf32>
    %c0_3 = arith.constant 0 : index
    %c0_4 = arith.constant 0 : index
    %3 = vector.load %arg3[%c0_3, %c0_4] : memref<1x128xf32, #tpu.memory_space<vmem>>, vector<1x128xf32>
    %4 = vector.broadcast %3 : vector<1x128xf32> to vector<8x128xf32>
    %5 = arith.addf %2, %4 : vector<8x128xf32>
    %c0_5 = arith.constant 0 : index
    %c0_6 = arith.constant 0 : index
    %6 = vector.load %arg4[%c0_5, %c0_6] : memref<8x128xf32, #tpu.memory_space<vmem>>, vector<8x128xf32>
    tpu.vector_store %arg4[%c0_5, %c0_6], %5 {strides = array<i32>} : memref<8x128xf32, #tpu.memory_space<vmem>>, vector<8x128xf32>,
    return
  }
  func.func @transform_0(%arg0: i32) -> (i32, i32) {
    %c0_i32 = arith.constant 0 : i32
    %c0_i32_0 = arith.constant 0 : i32
    return %arg0, %c0_i32 : i32, i32
  }
  func.func @transform_1(%arg0: i32) -> (i32, i32) {
    %c0_i32 = arith.constant 0 : i32
    %c0_i32_0 = arith.constant 0 : i32
    %c0_i32_1 = arith.constant 0 : i32
    return %c0_i32, %c0_i32_0 : i32, i32
  }
  func.func @transform_2(%arg0: i32) -> (i32, i32) {
    %c0_i32 = arith.constant 0 : i32
    %c0_i32_0 = arith.constant 0 : i32
    %c0_i32_1 = arith.constant 0 : i32
    return %c0_i32, %c0_i32_0 : i32, i32
  }
  func.func @transform_3(%arg0: i32) -> (i32, i32) {
    %c0_i32 = arith.constant 0 : i32
    %c0_i32_0 = arith.constant 0 : i32
    return %arg0, %c0_i32 : i32, i32
  }
}

</mosaic_0001>

<bundles_post_ra>
// kernel: tpu_custom_call.1
= control target key start
LH: loop header
LB: loop body
LE: loop exit
PB: predicated region body
PF: predicated region fallthrough
CT: control target
= control target key end

     0   :  { %8 = vsyncpa [#allocation3], 0  ;;  %s512_s0 = inlined_call_operand.hbm [shape: f32[2,512], index: 0, kind: input, shape index: {}]   ;;  %s513_s1 = inlined_call_operand.hbm [shape: f32[512,128], index: 1, kind: input, shape index: {}]   ;;  %s514_s2 = inlined_call_operand.vmem [shape: f32[1,128], index: 2, kind: input, shape index: {}]   ;;  %s515_s3 = inlined_call_operand.hbm [shape: f32[2,128], index: 3, kind: output, shape index: {}]  }
   0x1   :  { %9 = vsyncpa [#allocation6], 0 }
   0x2   :  { %10 = vsyncpa [#allocation4], 0 }
   0x3   :  { %15 = vsyncadd [#allocation3], 384  ;;  %s472_s12 = smov [#allocation2]  }
   0x4   :  { %s16_s13 = sshll.u32 %s472_s12, 4  ;;  %s17_s13 = int_to_ptr.vmem [resolvable:$true] %s16_s13 }
   0x5   :  { %s414_s14 = scalar_lea.vmem %s17_s13, 128  ;;  %s418_s15 = scalar_lea.vmem %s17_s13, 512 }
   0x6   :  { %p415_p0 = scmp.ne.s32.totalorder %s17_s13, %s414_s14  ;;  %p419_p1 = scmp.lt.s32.totalorder %s17_s13, %s17_s13 }
   0x7   :  { %p420_p2 = scmp.lt.s32.totalorder %s418_s15, %s414_s14 }
   0x9   :  { %p421_p3 = por %p420_p2, %p419_p1 }
   0xb   :  { %p422_p4 = pnand %p421_p3, %p415_p0 }
   0xd   :  { %425 = shalt.err (!%p422_p4)
}
   0xe   :  { %s473_s16 = smov 128   ;;  %s474_s17 = smov 8  }
   0xf   :  { %22 = dma.hbm_to_vmem [thread:$0]  %s512_s0, 128, %s17_s13, [#allocation3], %s473_s16, %s473_s16, %s474_s17  }
  0x10   :  { %s475_s20 = smov [#allocation5]  }
  0x11   :  { %s28_s21 = sshll.u32 %s475_s20, 4  ;;  %s29_s21 = int_to_ptr.vmem [resolvable:$true] %s28_s21 }
  0x12   :  { %s434_s22 = scalar_lea.vmem %s29_s21, 8192  ;;  %p439_p6 = scmp.lt.s32.totalorder %s29_s21, %s29_s21 }
  0x13   :  { %p435_p5 = scmp.ne.s32.totalorder %s29_s21, %s434_s22  ;;  %p440_p7 = scmp.lt.s32.totalorder %s434_s22, %s434_s22 }
  0x15   :  { %p441_p8 = por %p440_p7, %p439_p6 }
  0x17   :  { %p442_p9 = pnand %p441_p8, %p435_p5 }
  0x19   :  { %445 = shalt.err (!%p442_p9)
}
  0x1a   :  { %34 = dma.hbm_to_vmem [thread:$0]  %s513_s1, 8192, %s29_s21, [#allocation6], %s473_s16, %s473_s16, %s474_s17  }
  0x1b   :  { %466 = dma.done.wait [#allocation3], 512  }
  0x1c   :  { %467 = vsyncadd [#allocation3], 4294966784 }
  0x1d   :  { %468 = dma.done.wait [#allocation6], 8192  }
  0x1e   :  { %469 = vsyncadd [#allocation6], 4294959104  ;;  %v78_v0 = vld [vmem:[#allocation5 + $0xf8] sm:$0xff]  ;;  %v77_v4 = vld [vmem:[#allocation5 + $0xf0] sm:$0xff]  ;;  %v476_v30 = vmov 1983009808   ;;  %v129_v32 = vlaneseq }
  0x1f   :  { %v110_v1 = vld [vmem:[#allocation5 + $0x1f8] sm:$0xff]  ;;  %322 = vmatprep.subr.mxu0 %v78_v0  ;;  %v109_v5 = vld [vmem:[#allocation5 + $0x1f0] sm:$0xff]  ;;  %v76_v8 = vld [vmem:[#allocation5 + $0xe8] sm:$0xff]  ;;  %v127_v31 = vunpack.c.l.s4 %v476_v30 }
  0x20   :  { %v62_v2 = vld [vmem:[#allocation5 + $0x78] sm:$0xff]  ;;  %357 = vmatprep.subr.mxu1 %v110_v1  ;;  %v61_v6 = vld [vmem:[#allocation5 + $0x70] sm:$0xff]  ;;  %v108_v9 = vld [vmem:[#allocation5 + $0x1e8] sm:$0xff]  ;;  %v130_v42 = vshrl.u32 %v129_v32, 7 }
  0x21   :  { %v94_v3 = vld [vmem:[#allocation5 + $0x178] sm:$0xff]  ;;  %323 = vmatpush3.msra.mxu0 %v62_v2  ;;  %v93_v7 = vld [vmem:[#allocation5 + $0x170] sm:$0xff]  ;;  %v60_v10 = vld [vmem:[#allocation5 + $0x68] sm:$0xff]  ;;  %v128_v41 = vunpack.c.0.s8 %v127_v31 }
  0x22   :  { %358 = vmatpush3.msra.mxu1 %v94_v3  ;;  %324 = vmatprep.subr.mxu0 %v77_v4  ;;  %v92_v11 = vld [vmem:[#allocation5 + $0x168] sm:$0xff]  ;;  %v75_v12 = vld [vmem:[#allocation5 + $0xe0] sm:$0xff]  ;;  %v74_v16 = vld [vmem:[#allocation5 + $0xd8] sm:$0xff] }
  0x23   :  { %359 = vmatprep.subr.mxu1 %v109_v5  ;;  %325 = vmatpush3.msra.mxu0 %v61_v6  ;;  %v107_v13 = vld [vmem:[#allocation5 + $0x1e0] sm:$0xff]  ;;  %v106_v17 = vld [vmem:[#allocation5 + $0x1d8] sm:$0xff]  ;;  %v73_v20 = vld [vmem:[#allocation5 + $0xd0] sm:$0xff]  ;;  %v131_v55 = vsub.s32 %v128_v41, %v130_v42 }
  0x24   :  { %360 = vmatpush3.msra.mxu1 %v93_v7  ;;  %326 = vmatprep.subr.mxu0 %v76_v8  ;;  %v59_v14 = vld [vmem:[#allocation5 + $0x60] sm:$0xff]  ;;  %v58_v18 = vld [vmem:[#allocation5 + $0x58] sm:$0xff]  ;;  %v105_v21 = vld [vmem:[#allocation5 + $0x1d0] sm:$0xff] }
  0x25   :  { %361 = vmatprep.subr.mxu1 %v108_v9  ;;  %v91_v15 = vld [vmem:[#allocation5 + $0x160] sm:$0xff]  ;;  %327 = vmatpush3.msra.mxu0 %v60_v10  ;;  %v90_v19 = vld [vmem:[#allocation5 + $0x158] sm:$0xff]  ;;  %v57_v22 = vld [vmem:[#allocation5 + $0x50] sm:$0xff] }
  0x26   :  { %362 = vmatpush3.msra.mxu1 %v92_v11  ;;  %328 = vmatprep.subr.mxu0 %v75_v12  ;;  %v89_v23 = vld [vmem:[#allocation5 + $0x150] sm:$0xff]  ;;  %v72_v24 = vld [vmem:[#allocation5 + $0xc8] sm:$0xff]  ;;  %v71_v28 = vld [vmem:[#allocation5 + $0xc0] sm:$0xff] }
  0x27   :  { %363 = vmatprep.subr.mxu1 %v107_v13  ;;  %329 = vmatpush3.msra.mxu0 %v59_v14  ;;  %v104_v25 = vld [vmem:[#allocation5 + $0x1c8] sm:$0xff]  ;;  %v103_v29 = vld [vmem:[#allocation5 + $0x1c0] sm:$0xff]  ;;  %v70_v35 = vld [vmem:[#allocation5 + $0xb8] sm:$0xff] }
  0x28   :  { %364 = vmatpush3.msra.mxu1 %v91_v15  ;;  %330 = vmatprep.subr.mxu0 %v74_v16  ;;  %v56_v26 = vld [vmem:[#allocation5 + $0x48] sm:$0xff]  ;;  %v55_v33 = vld [vmem:[#allocation5 + $0x40] sm:$0xff]  ;;  %v102_v36 = vld [vmem:[#allocation5 + $0x1b8] sm:$0xff] }
  0x29   :  { %365 = vmatprep.subr.mxu1 %v106_v17  ;;  %331 = vmatpush3.msra.mxu0 %v58_v18  ;;  %v88_v27 = vld [vmem:[#allocation5 + $0x148] sm:$0xff]  ;;  %v87_v34 = vld [vmem:[#allocation5 + $0x140] sm:$0xff]  ;;  %v54_v37 = vld [vmem:[#allocation5 + $0x38] sm:$0xff] }
  0x2a   :  { %366 = vmatpush3.msra.mxu1 %v90_v19  ;;  %332 = vmatprep.subr.mxu0 %v73_v20  ;;  %v86_v38 = vld [vmem:[#allocation5 + $0x138] sm:$0xff]  ;;  %v69_v39 = vld [vmem:[#allocation5 + $0xb0] sm:$0xff]  ;;  %v68_v45 = vld [vmem:[#allocation5 + $0xa8] sm:$0xff] }
  0x2b   :  { %367 = vmatprep.subr.mxu1 %v105_v21  ;;  %333 = vmatpush3.msra.mxu0 %v57_v22  ;;  %v101_v40 = vld [vmem:[#allocation5 + $0x1b0] sm:$0xff]  ;;  %v100_v46 = vld [vmem:[#allocation5 + $0x1a8] sm:$0xff]  ;;  %v67_v49 = vld [vmem:[#allocation5 + $0xa0] sm:$0xff] }
  0x2c   :  { %368 = vmatpush3.msra.mxu1 %v89_v23  ;;  %334 = vmatprep.subr.mxu0 %v72_v24  ;;  %v53_v43 = vld [vmem:[#allocation5 + $0x30] sm:$0xff]  ;;  %v52_v47 = vld [vmem:[#allocation5 + $0x28] sm:$0xff]  ;;  %v99_v50 = vld [vmem:[#allocation5 + $0x1a0] sm:$0xff] }
  0x2d   :  { %369 = vmatprep.subr.mxu1 %v104_v25  ;;  %335 = vmatpush3.msra.mxu0 %v56_v26  ;;  %v85_v44 = vld [vmem:[#allocation5 + $0x130] sm:$0xff]  ;;  %v84_v48 = vld [vmem:[#allocation5 + $0x128] sm:$0xff]  ;;  %v51_v51 = vld [vmem:[#allocation5 + $0x20] sm:$0xff] }
  0x2e   :  { %370 = vmatpush3.msra.mxu1 %v88_v27  ;;  %336 = vmatprep.subr.mxu0 %v71_v28  ;;  %v83_v52 = vld [vmem:[#allocation5 + $0x120] sm:$0xff]  ;;  %v66_v53 = vld [vmem:[#allocation5 + $0x98] sm:$0xff]  ;;  %v65_v62 = vld [vmem:[#allocation5 + $0x90] sm:$0xff] }
  0x2f   :  { %371 = vmatprep.subr.mxu1 %v103_v29  ;;  %337 = vmatpush3.msra.mxu0 %v55_v33  ;;  %v98_v54 = vld [vmem:[#allocation5 + $0x198] sm:$0xff]  ;;  %v400_v57 = vld [vmem:[#allocation2] ss:$8 sps:$4 sm:$0xff]   ;;  %v404_v60 = vld [vmem:[#allocation2 + $0x4] ss:$8 sps:$4 sm:$0xff]  }
  0x30   :  { %372 = vmatpush3.msra.mxu1 %v87_v34  ;;  %338 = vmatprep.subr.mxu0 %v70_v35  ;;  %v50_v56 = vld [vmem:[#allocation5 + $0x18] sm:$0xff]  ;;  %v97_v63 = vld [vmem:[#allocation5 + $0x190] sm:$0xff]  ;;  %v132_v0 = vrot.slane %v400_v57, %v131_v55  ;;  %v139_v4 = vrot.slane %v404_v60, %v131_v55  ;;  %v64_v6 = vld [vmem:[#allocation5 + $0x88] sm:$0xff] }
  0x31   :  { %373 = vmatprep.subr.mxu1 %v102_v36  ;;  %339 = vmatpush3.msra.mxu0 %v54_v37  ;;  %v402_v58 = vld [vmem:[#allocation2 + $0x10] ss:$8 sps:$4 sm:$0xff]   ;;  %v405_v61 = vld [vmem:[#allocation2 + $0x14] ss:$8 sps:$4 sm:$0xff]   ;;  %v96_v7 = vld [vmem:[#allocation5 + $0x188] sm:$0xff] }
  0x32   :  { %374 = vmatpush3.msra.mxu1 %v86_v38  ;;  %340 = vmatprep.subr.mxu0 %v69_v39  ;;  %v82_v59 = vld [vmem:[#allocation5 + $0x118] sm:$0xff]  ;;  %v146_v1 = vrot.slane %v402_v58, %v131_v55  ;;  %v49_v2 = vld [vmem:[#allocation5 + $0x10] sm:$0xff]  ;;  %v153_v5 = vrot.slane %v405_v61, %v131_v55  ;;  %v48_v8 = vld [vmem:[#allocation5 + $0x8] sm:$0xff] }
  0x33   :  { %375 = vmatprep.subr.mxu1 %v101_v40  ;;  %341 = vmatpush3.msra.mxu0 %v53_v43  ;;  %v81_v3 = vld [vmem:[#allocation5 + $0x110] sm:$0xff]  ;;  %v80_v9 = vld [vmem:[#allocation5 + $0x108] sm:$0xff]  ;;  %v63_v10 = vld [vmem:[#allocation5 + $0x80] sm:$0xff] }
  0x34   :  { %376 = vmatpush3.msra.mxu1 %v85_v44  ;;  %342 = vmatprep.subr.mxu0 %v68_v45  ;;  %v95_v11 = vld [vmem:[#allocation5 + $0x180] sm:$0xff]  ;;  %v155_v12 = vcombine.high %v132_v0, %v146_v1  ;;  %v157_v14 = vcombine.high %v139_v4, %v153_v5  ;;  %v154_v16 = vcombine.low %v132_v0, %v146_v1 }
  0x35   :  { %377 = vmatprep.subr.mxu1 %v100_v46  ;;  %343 = vmatpush3.msra.mxu0 %v52_v47  ;;  %v47_v13 = vld [vmem:[#allocation5] sm:$0xff]  ;;  %v156_v17 = vcombine.low %v139_v4, %v153_v5 }
  0x36   :  { %378 = vmatpush3.msra.mxu1 %v84_v48  ;;  %344 = vmatprep.subr.mxu0 %v67_v49  ;;  %v79_v15 = vld [vmem:[#allocation5 + $0x100] sm:$0xff] }
  0x37   :  { %379 = vmatprep.subr.mxu1 %v99_v50  ;;  %345 = vmatpush3.msra.mxu0 %v51_v51  ;;  %v321_v20 = vld [vmem:[%s514_s2] ss:$0 sm:$0xff] }
  0x38   :  { %380 = vmatpush3.msra.mxu1 %v83_v52  ;;  %346 = vmatprep.subr.mxu0 %v66_v53 }
  0x39   :  { %381 = vmatprep.subr.mxu1 %v98_v54  ;;  %347 = vmatpush3.msra.mxu0 %v50_v56 }
  0x3a   :  { %382 = vmatpush3.msra.mxu1 %v82_v59  ;;  %348 = vmatprep.subr.mxu0 %v65_v62 }
  0x3b   :  { %383 = vmatprep.subr.mxu1 %v97_v63  ;;  %349 = vmatpush3.msra.mxu0 %v49_v2 }
  0x3c   :  { %384 = vmatpush3.msra.mxu1 %v81_v3  ;;  %350 = vmatprep.subr.mxu0 %v64_v6 }
  0x3d   :  { %385 = vmatprep.subr.mxu1 %v96_v7  ;;  %351 = vmatpush3.msra.mxu0 %v48_v8 }
  0x3e   :  { %386 = vmatpush3.msra.mxu1 %v80_v9  ;;  %352 = vmatprep.subr.mxu0 %v63_v10 }
  0x3f   :  { %387 = vmatprep.subr.mxu1 %v95_v11  ;;  %353 = vmatpush3.msra.mxu0 %v47_v13 }
  0x40   :  { %226 = vmatprep.mubr.f32.mxu0 %v155_v12  ;;  %388 = vmatpush3.msra.mxu1 %v79_v15 }
  0x41   :  { %296 = vmatprep.mubr.f32.mxu1 %v157_v14  ;;  %227 = vmatmul.mubr.f32.vlgmr.msra.gmra.mxu0 %v154_v16 }
  0x42   :  { %297 = vmatmul.mubr.f32.vlgmr.msra.gmra.mxu1 %v156_v17 }
 0x101   :  { %v354_v18 = vpop.f32.mrf.mxu0 }
 0x102   :  { %v389_v19 = vpop.f32.mrf.mxu1 }
 0x103   :  { %v355_v21 = vpop.f32.mrf.mxu0 }
 0x104   :  { %v390_v22 = vpop.f32.mrf.mxu1  ;;  %v356_v23 = vadd.f32 %v355_v21, %v354_v18 }
 0x105   :  { %v391_v25 = vadd.f32 %v390_v22, %v389_v19 }
 0x106   :  { %v229_v24 = vadd.f32 %v356_v23, %v321_v20 }
 0x108   :  { %v299_v26 = vadd.f32 %v391_v25, %v229_v24 }
 0x10a   :  { %302 = vst [vmem:[#allocation7] sm:$0xff] %v299_v26 }
 0x10b   :  { %307 = vsyncadd [#allocation4], 96  ;;  %s477_s25 = smov [#allocation7]  }
 0x10c   :  { %s308_s26 = sshll.u32 %s477_s25, 4  ;;  %s309_s26 = int_to_ptr.vmem [resolvable:$true] %s308_s26 }
 0x10d   :  { %s446_s27 = scalar_lea.vmem %s309_s26, 32  ;;  %s450_s28 = scalar_lea.vmem %s309_s26, 128 }
 0x10e   :  { %p447_p10 = scmp.ne.s32.totalorder %s309_s26, %s446_s27  ;;  %p451_p11 = scmp.lt.s32.totalorder %s309_s26, %s309_s26 }
 0x10f   :  { %p452_p12 = scmp.lt.s32.totalorder %s450_s28, %s446_s27 }
 0x111   :  { %p453_p13 = por %p452_p12, %p451_p11 }
 0x113   :  { %p454_p0 = pnand %p453_p13, %p447_p10 }
 0x115   :  { %457 = shalt.err (!%p454_p0)
}
 0x116   :  { %s478_s2 = smov 32   ;;  %s479_s29 = smov 2  }
 0x117   :  { %314 = dma.vmem_to_hbm [thread:$0]  %s309_s26, 32, %s515_s3, [#allocation4], %s478_s2, %s478_s2, %s479_s29  }
 0x118   :  { %470 = dma.done.wait [#allocation4], 128  }
 0x119   :  { %471 = vsyncadd [#allocation4], 4294967168 }
 0x11a   :  { %318 = vsyncpa [#allocation3], 1 }
 0x11b   :  { %319 = vsyncpa [#allocation6], 1 }
 0x11c   :  { %320 = vsyncpa [#allocation4], 1 }

</bundles_post_ra>
